<compile_context>
chip_gen: v7x
topology: tpu7x:2x2x1
jax: 0.10.0
libtpu: 0.0.40
codegen_flags: <defaults>
</compile_context>

<pallas_src>
import jax
import jax.numpy as jnp
from jax.experimental import pallas as pl
from jax.experimental.pallas import tpu as pltpu


def _round_up(x, m):
    return ((x + m - 1) // m) * m


def _additive_attention_kernel(q_ref, ctx_ref, mask_ref, wqT_ref, wcT_ref, wv_ref,
                               c_ref, w_ref):
    f32 = jnp.float32
    BB, Tp, Dc = ctx_ref.shape

    ctx = ctx_ref[...]                                     # (BB, Tp, Dc) bf16/f32

    # Query projection for the whole batch block: (BB, Dq) @ (Dq, E) -> (BB, E).
    pq = jnp.dot(q_ref[...], wqT_ref[...], preferred_element_type=f32)

    # Context projection with batch*time as the MXU M dimension:
    # (BB*Tp, Dc) @ (Dc, E), low-precision inputs / f32 accumulation.  Tp is a
    # multiple of 8 so the reshape only regroups sublane tiles.
    pc = jnp.dot(ctx.reshape(BB * Tp, Dc), wcT_ref[...], preferred_element_type=f32)
    pc = pc.reshape(BB, Tp, -1)                            # (BB, Tp, E) f32

    e = jnp.tanh(pq[:, None, :] + pc)                      # (BB, Tp, E)

    # Energy ("v") projection: VPU broadcast-multiply + lane reduce over E
    # (an MXU matmul here would have N=1 and waste the systolic array).
    energies = jnp.sum(e * wv_ref[...], axis=-1)           # (BB, Tp)

    # masked_fill(mask, -inf): a large finite value keeps fully-masked / padded
    # rows NaN-free while matching softmax(-inf) exactly for real rows.
    energies = jnp.where(mask_ref[...] > 0, -1e30, energies)

    # Softmax over time (lane axis).  Exact normalization: one divide on the
    # (BB, 1) sum is negligible and makes the weights sum to exactly 1.
    m = jnp.max(energies, axis=-1, keepdims=True)          # (BB, 1)
    p = jnp.exp(energies - m)                              # (BB, Tp)
    s = jnp.sum(p, axis=-1, keepdims=True)                 # (BB, 1)
    w = p * (1.0 / s)

    w_ref[...] = w                                         # (BB, Tp)

    # Attention context: VPU broadcast-multiply + sublane (time) reduction, f32
    # accumulation.  Masked / padded time steps have weight 0, so they never leak.
    c_ref[...] = jnp.sum(w[:, :, None] * ctx.astype(f32), axis=1)   # (BB, Dc)


def _pick_batch_block(B, Tp, Dc, E, ctx_itemsize, requested):
    if requested is None:
        # ~16 MiB per-step working set: 2x ctx block (double-buffered DMA) plus
        # ~4 f32 (BB, Tp, max(E, Dc)) temporaries (pc / e / f32 ctx / broadcast).
        per_row = Tp * (2 * Dc * ctx_itemsize + 4 * max(E, Dc) * 4)
        bb = (16 * 2 ** 20) // max(per_row, 1)
        bb = max(8, min(128, (bb // 8) * 8))
    else:
        bb = max(1, requested)
    if B <= bb:
        # One block spans the full batch axis (legal for any B since the block
        # equals the array dim) -> no batch padding, no host-side context copy.
        # TODO(synk): on v7x, B <= 8 gives grid=(1,) which leaves one of the two
        # TensorCores idle; splitting such tiny batches would need a second
        # parallel grid axis over time chunks.
        return B
    return max(8, (bb // 8) * 8)   # multiple of 8 so partial trailing blocks stay legal


def additive_attention_forward(query, context, mask, params, *,
                               batch_block=None, context_dtype=jnp.bfloat16):
    """Pallas forward of AdditiveAttention.

    query   : (B, Dq) or (B, 1, Dq)   Dq = symbols_embedding_dim
    context : (B, T, Dc)              Dc = word_embedding_dim
    mask    : (B, T) bool (True = masked) or None
    params  : wq (E, Dq), wc (E, Dc), wv (1, E)  -- torch Linear (out, in) layout
    context_dtype : dtype the dominant context tensor is streamed / matmul'd in
                    (bfloat16 halves its HBM traffic; f32 accumulation is kept).

    Returns (attention_context (B, 1, Dc), attention_scores (B, 1, T)).
    """
    wq, wc, wv = params["wq"], params["wc"], params["wv"]
    if query.ndim == 3:
        query = query[:, 0, :]
    B, Dq = query.shape
    _, T, Dc = context.shape
    E = wq.shape[0]
    f32 = jnp.float32

    # --- layout plumbing (cheap; no 128-padding, no padded copy of context) ----
    # Time is rounded up to the sublane quantum (8) only when needed, so the
    # in-kernel (BB, Tp, Dc) -> (BB*Tp, Dc) reshape is a free sublane regrouping.
    Tp = _round_up(T, 8)
    q_p = query.astype(f32)
    # TODO(synk): in a real pipeline the producer should emit context in bf16
    # directly; this cast is the only remaining host-side pass over the tensor.
    ctx_p = context.astype(context_dtype)
    if mask is None:
        mask_i32 = jnp.zeros((B, T), jnp.int32)
    else:
        mask_i32 = mask.astype(jnp.int32)
    if Tp != T:
        ctx_p = jnp.pad(ctx_p, ((0, 0), (0, Tp - T), (0, 0)))
        mask_i32 = jnp.pad(mask_i32, ((0, 0), (0, Tp - T)), constant_values=1)

    wqT = wq.T.astype(f32)                        # (Dq, E)
    wcT = wc.T.astype(context_dtype)              # (Dc, E)
    wv_p = wv.reshape(1, E).astype(f32)           # (1, E)

    ctx_itemsize = jnp.dtype(context_dtype).itemsize
    BB = _pick_batch_block(B, Tp, Dc, E, ctx_itemsize, batch_block)
    grid = (pl.cdiv(B, BB),)

    # VMEM budget: double-buffered blocks + staged weights + f32 temporaries,
    # with 2x margin, capped at 64 MiB (v7x physical VMEM per TensorCore).
    vmem_est = (2 * BB * Tp * Dc * ctx_itemsize
                + 2 * (BB * Dq + 2 * BB * Tp + BB * Dc) * 4
                + (Dq * E + E) * 4 + Dc * E * ctx_itemsize
                + 4 * BB * Tp * max(E, Dc) * 4)
    vmem_limit = int(min(max(2 * vmem_est, 32 * 2 ** 20), 64 * 2 ** 20))

    c_out, w_out = pl.pallas_call(
        _additive_attention_kernel,
        out_shape=(jax.ShapeDtypeStruct((B, Dc), f32),
                   jax.ShapeDtypeStruct((B, Tp), f32)),
        grid_spec=pltpu.PrefetchScalarGridSpec(
            num_scalar_prefetch=0,
            grid=grid,
            in_specs=[
                pl.BlockSpec((BB, Dq), lambda b: (b, 0)),           # query
                pl.BlockSpec((BB, Tp, Dc), lambda b: (b, 0, 0)),    # context (bf16)
                pl.BlockSpec((BB, Tp), lambda b: (b, 0)),           # mask
                # Weights: constant block index -> staged into VMEM once.
                pl.BlockSpec((Dq, E), lambda b: (0, 0)),            # W_q^T
                pl.BlockSpec((Dc, E), lambda b: (0, 0)),            # W_c^T
                pl.BlockSpec((1, E), lambda b: (0, 0)),             # v
            ],
            out_specs=[
                pl.BlockSpec((BB, Dc), lambda b: (b, 0)),           # context vec
                pl.BlockSpec((BB, Tp), lambda b: (b, 0)),           # attn weights
            ],
        ),
        compiler_params=pltpu.CompilerParams(
            dimension_semantics=("parallel",),   # independent batch blocks
            vmem_limit_bytes=vmem_limit),
    )(q_p, ctx_p, mask_i32, wqT, wcT, wv_p)

    scores = w_out[:, :T] if Tp != T else w_out
    return c_out[:, None, :], scores[:, None, :]


def additive_attention_reference(query, context, mask, params):
    """Pure-JAX reference matching the PyTorch forward semantics."""
    pq = (query @ params["wq"].T)[:, None, :]                 # (B, 1, E)
    pc = context @ params["wc"].T                             # (B, T, E)
    energies = (jnp.tanh(pq + pc) @ params["wv"].T)[..., 0]   # (B, T)
    if mask is not None:
        energies = jnp.where(mask, -jnp.inf, energies)
    scores = jax.nn.softmax(energies, axis=-1)[:, None, :]    # (B, 1, T)
    c = jnp.einsum("bqt,btd->bqd", scores, context)           # (B, 1, Dc)
    return c, scores


if __name__ == "__main__":
    B, T = 2, 8          # batch, num words
    Dq = 32              # symbols_embedding_dim
    Dc = 24              # word_embedding_dim
    E = 48               # encoder_embedding_dim

    key = jax.random.PRNGKey(0)
    ks = jax.random.split(key, 6)
    params = {
        "wq": jax.random.normal(ks[0], (E, Dq), jnp.float32) * (1.0 / jnp.sqrt(Dq)),
        "wc": jax.random.normal(ks[1], (E, Dc), jnp.float32) * (1.0 / jnp.sqrt(Dc)),
        "wv": jax.random.normal(ks[2], (1, E), jnp.float32) * (1.0 / jnp.sqrt(E)),
    }
    query = jax.random.normal(ks[3], (B, Dq), jnp.float32)
    context = jax.random.normal(ks[4], (B, T, Dc), jnp.float32)
    lengths = jnp.array([T, T - 3], jnp.int32)
    mask = jnp.arange(T)[None, :] >= lengths[:, None]        # (B, T), True = padded

    c, scores = additive_attention_forward(query, context, mask, params)
    jax.block_until_ready((c, scores))

    assert c.shape == (B, 1, Dc) and scores.shape == (B, 1, T)

    # Exact normalization: attention weights sum to 1 (review correctness item).
    assert jnp.allclose(jnp.sum(scores, axis=-1), 1.0, atol=1e-5)

    # Tight check against a reference that sees the same bf16-rounded context / W_c
    # (verifies the kernel math; only accumulation order differs).
    params_bf16 = dict(params,
                       wc=params["wc"].astype(jnp.bfloat16).astype(jnp.float32))
    context_bf16 = context.astype(jnp.bfloat16).astype(jnp.float32)
    c_ref16, s_ref16 = additive_attention_reference(query, context_bf16, mask,
                                                    params_bf16)
    assert jnp.allclose(scores, s_ref16, atol=5e-3, rtol=5e-3)
    assert jnp.allclose(c, c_ref16, atol=5e-3, rtol=5e-3)

    # Looser check against the f32 PyTorch-equivalent reference: the bf16 context
    # feed (perf-review item) trades ~1e-2-level error for half the HBM traffic.
    c_ref, scores_ref = additive_attention_reference(query, context, mask, params)
    assert jnp.allclose(scores, scores_ref, atol=5e-2, rtol=5e-2)
    assert jnp.allclose(c, c_ref, atol=5e-2, rtol=5e-2)

    print("KERNEL_OK")
</pallas_src>

<mosaic_0001>
module attributes {stable_mosaic.version = 11 : i64} {
  func.func @_additive_attention_kernel(%arg0: i32, %arg1: memref<2x32xf32, #tpu.memory_space<vmem>>, %arg2: memref<2x8x24xbf16, #tpu.memory_space<vmem>>, %arg3: memref<2x8xi32, #tpu.memory_space<vmem>>, %arg4: memref<32x48xf32, #tpu.memory_space<vmem>>, %arg5: memref<24x48xbf16, #tpu.memory_space<vmem>>, %arg6: memref<1x48xf32, #tpu.memory_space<vmem>>, %arg7: memref<2x24xf32, #tpu.memory_space<vmem>>, %arg8: memref<2x8xf32, #tpu.memory_space<vmem>>) attributes {dimension_semantics = [#tpu.dimension_semantics<parallel>], iteration_bounds = array<i64: 1>, scalar_prefetch = 0 : i64, scratch_operands = 0 : i64, tpu.core_type = #tpu.core_type<tc>, window_params = [{transform_indices = @transform_0, window_bounds = array<i64: 2, 32>}, {transform_indices = @transform_1, window_bounds = array<i64: 2, 8, 24>}, {transform_indices = @transform_2, window_bounds = array<i64: 2, 8>}, {pipeline_mode = #tpu.pipeline_mode<synchronous>, transform_indices = @transform_3, window_bounds = array<i64: 32, 48>}, {pipeline_mode = #tpu.pipeline_mode<synchronous>, transform_indices = @transform_4, window_bounds = array<i64: 24, 48>}, {pipeline_mode = #tpu.pipeline_mode<synchronous>, transform_indices = @transform_5, window_bounds = array<i64: 1, 48>}, {transform_indices = @transform_6, window_bounds = array<i64: 2, 24>}, {transform_indices = @transform_7, window_bounds = array<i64: 2, 8>}]} {
    %c0 = arith.constant 0 : index
    %c0_0 = arith.constant 0 : index
    %c0_1 = arith.constant 0 : index
    %0 = vector.load %arg2[%c0, %c0_0, %c0_1] : memref<2x8x24xbf16, #tpu.memory_space<vmem>>, vector<2x8x24xbf16>
    %c0_2 = arith.constant 0 : index
    %c0_3 = arith.constant 0 : index
    %1 = vector.load %arg1[%c0_2, %c0_3] : memref<2x32xf32, #tpu.memory_space<vmem>>, vector<2x32xf32>
    %c0_4 = arith.constant 0 : index
    %c0_5 = arith.constant 0 : index
    %2 = vector.load %arg4[%c0_4, %c0_5] : memref<32x48xf32, #tpu.memory_space<vmem>>, vector<32x48xf32>
    %cst = arith.constant dense<0.000000e+00> : vector<2x48xf32>
    %3 = tpu.matmul %1, %2, %cst {dimension_numbers = #tpu.dot_dimension_numbers<[1], [0], [0], [1], [0, 0, 1, 1], [], []>} : vector<2x32xf32>, vector<32x48xf32>, vector<2x48xf32> -> vector<2x48xf32>
    %4 = vector.shape_cast %0 : vector<2x8x24xbf16> to vector<16x24xbf16>
    %c0_6 = arith.constant 0 : index
    %c0_7 = arith.constant 0 : index
    %5 = vector.load %arg5[%c0_6, %c0_7] : memref<24x48xbf16, #tpu.memory_space<vmem>>, vector<24x48xbf16>
    %cst_8 = arith.constant dense<0.000000e+00> : vector<16x48xf32>
    %6 = tpu.matmul %4, %5, %cst_8 {dimension_numbers = #tpu.dot_dimension_numbers<[1], [0], [0], [1], [0, 0, 1, 1], [], []>} : vector<16x24xbf16>, vector<24x48xbf16>, vector<16x48xf32> -> vector<16x48xf32>
    %7 = vector.shape_cast %6 : vector<16x48xf32> to vector<2x8x48xf32>
    %8 = vector.shape_cast %3 : vector<2x48xf32> to vector<2x1x48xf32>
    %9 = vector.broadcast %8 : vector<2x1x48xf32> to vector<2x8x48xf32>
    %10 = arith.addf %9, %7 : vector<2x8x48xf32>
    %11 = math.tanh %10 : vector<2x8x48xf32>
    %c0_9 = arith.constant 0 : index
    %c0_10 = arith.constant 0 : index
    %12 = vector.load %arg6[%c0_9, %c0_10] : memref<1x48xf32, #tpu.memory_space<vmem>>, vector<1x48xf32>
    %13 = vector.shape_cast %12 : vector<1x48xf32> to vector<1x1x48xf32>
    %14 = vector.broadcast %13 : vector<1x1x48xf32> to vector<2x8x48xf32>
    %15 = arith.mulf %11, %14 : vector<2x8x48xf32>
    %cst_11 = arith.constant dense<0.000000e+00> : vector<2x8xf32>
    %16 = vector.multi_reduction <add>, %15, %cst_11 [2] : vector<2x8x48xf32> to vector<2x8xf32>
    %c0_12 = arith.constant 0 : index
    %c0_13 = arith.constant 0 : index
    %17 = vector.load %arg3[%c0_12, %c0_13] : memref<2x8xi32, #tpu.memory_space<vmem>>, vector<2x8xi32>
    %c0_i32 = arith.constant 0 : i32
    %18 = vector.broadcast %c0_i32 : i32 to vector<2x8xi32>
    %19 = arith.cmpi sgt, %17, %18 : vector<2x8xi32>
    %cst_14 = arith.constant -1.000000e+30 : f32
    %20 = vector.broadcast %cst_14 : f32 to vector<2x8xf32>
    %21 = arith.select %19, %20, %16 : vector<2x8xi1>, vector<2x8xf32>
    %cst_15 = arith.constant dense<0xFF800000> : vector<2xf32>
    %22 = vector.multi_reduction <maximumf>, %21, %cst_15 [1] : vector<2x8xf32> to vector<2xf32>
    %23 = vector.shape_cast %22 : vector<2xf32> to vector<2x1xf32>
    %24 = vector.broadcast %23 : vector<2x1xf32> to vector<2x8xf32>
    %25 = arith.subf %21, %24 : vector<2x8xf32>
    %26 = math.exp %25 : vector<2x8xf32>
    %cst_16 = arith.constant dense<0.000000e+00> : vector<2xf32>
    %27 = vector.multi_reduction <add>, %26, %cst_16 [1] : vector<2x8xf32> to vector<2xf32>
    %28 = vector.shape_cast %27 : vector<2xf32> to vector<2x1xf32>
    %cst_17 = arith.constant 1.000000e+00 : f32
    %29 = vector.broadcast %cst_17 : f32 to vector<2x1xf32>
    %30 = arith.divf %29, %28 : vector<2x1xf32>
    %31 = vector.broadcast %30 : vector<2x1xf32> to vector<2x8xf32>
    %32 = arith.mulf %26, %31 : vector<2x8xf32>
    %c0_18 = arith.constant 0 : index
    %c0_19 = arith.constant 0 : index
    %33 = vector.load %arg8[%c0_18, %c0_19] : memref<2x8xf32, #tpu.memory_space<vmem>>, vector<2x8xf32>
    tpu.vector_store %arg8[%c0_18, %c0_19], %32 {strides = array<i32>} : memref<2x8xf32, #tpu.memory_space<vmem>>, vector<2x8xf32>,
    %34 = vector.shape_cast %32 : vector<2x8xf32> to vector<2x8x1xf32>
    %35 = arith.extf %0 : vector<2x8x24xbf16> to vector<2x8x24xf32>
    %36 = vector.broadcast %34 : vector<2x8x1xf32> to vector<2x8x24xf32>
    %37 = arith.mulf %36, %35 : vector<2x8x24xf32>
    %cst_20 = arith.constant dense<0.000000e+00> : vector<2x24xf32>
    %38 = vector.multi_reduction <add>, %37, %cst_20 [1] : vector<2x8x24xf32> to vector<2x24xf32>
    %c0_21 = arith.constant 0 : index
    %c0_22 = arith.constant 0 : index
    %39 = vector.load %arg7[%c0_21, %c0_22] : memref<2x24xf32, #tpu.memory_space<vmem>>, vector<2x24xf32>
    tpu.vector_store %arg7[%c0_21, %c0_22], %38 {strides = array<i32>} : memref<2x24xf32, #tpu.memory_space<vmem>>, vector<2x24xf32>,
    return
  }
  func.func @transform_0(%arg0: i32) -> (i32, i32) {
    %c0_i32 = arith.constant 0 : i32
    %c0_i32_0 = arith.constant 0 : i32
    return %arg0, %c0_i32 : i32, i32
  }
  func.func @transform_1(%arg0: i32) -> (i32, i32, i32) {
    %c0_i32 = arith.constant 0 : i32
    %c0_i32_0 = arith.constant 0 : i32
    %c0_i32_1 = arith.constant 0 : i32
    return %arg0, %c0_i32, %c0_i32_0 : i32, i32, i32
  }
  func.func @transform_2(%arg0: i32) -> (i32, i32) {
    %c0_i32 = arith.constant 0 : i32
    %c0_i32_0 = arith.constant 0 : i32
    return %arg0, %c0_i32 : i32, i32
  }
  func.func @transform_3(%arg0: i32) -> (i32, i32) {
    %c0_i32 = arith.constant 0 : i32
    %c0_i32_0 = arith.constant 0 : i32
    %c0_i32_1 = arith.constant 0 : i32
    return %c0_i32, %c0_i32_0 : i32, i32
  }
  func.func @transform_4(%arg0: i32) -> (i32, i32) {
    %c0_i32 = arith.constant 0 : i32
    %c0_i32_0 = arith.constant 0 : i32
    %c0_i32_1 = arith.constant 0 : i32
    return %c0_i32, %c0_i32_0 : i32, i32
  }
  func.func @transform_5(%arg0: i32) -> (i32, i32) {
    %c0_i32 = arith.constant 0 : i32
    %c0_i32_0 = arith.constant 0 : i32
    %c0_i32_1 = arith.constant 0 : i32
    return %c0_i32, %c0_i32_0 : i32, i32
  }
  func.func @transform_6(%arg0: i32) -> (i32, i32) {
    %c0_i32 = arith.constant 0 : i32
    %c0_i32_0 = arith.constant 0 : i32
    return %arg0, %c0_i32 : i32, i32
  }
  func.func @transform_7(%arg0: i32) -> (i32, i32) {
    %c0_i32 = arith.constant 0 : i32
    %c0_i32_0 = arith.constant 0 : i32
    return %arg0, %c0_i32 : i32, i32
  }
}

</mosaic_0001>

<bundles_post_ra>
// kernel: tpu_custom_call.1
= control target key start
LH: loop header
LB: loop body
LE: loop exit
PB: predicated region body
PF: predicated region fallthrough
CT: control target
= control target key end

     0   :  { %13 = vsyncpa [#allocation3], 0  ;;  %s687_s0 = inlined_call_operand.hbm [shape: f32[2,32], index: 0, kind: input, shape index: {}]   ;;  %s688_s1 = inlined_call_operand.hbm [shape: bf16[2,8,24], index: 1, kind: input, shape index: {}]   ;;  %s689_s2 = inlined_call_operand.vmem [shape: s32[2,8], index: 2, kind: input, shape index: {}]   ;;  %s690_s3 = inlined_call_operand.hbm [shape: f32[32,48], index: 3, kind: input, shape index: {}]   ;;  %s691_s4 = inlined_call_operand.vmem [shape: bf16[24,48], index: 4, kind: input, shape index: {}]   ;;  %s692_s5 = inlined_call_operand.vmem [shape: f32[1,48], index: 5, kind: input, shape index: {}]   ;;  %s693_s6 = inlined_call_operand.hbm [shape: f32[2,24], index: 6, kind: output, shape index: {0}]   ;;  %s694_s7 = inlined_call_operand.hbm [shape: f32[2,8], index: 7, kind: output, shape index: {1}]  }
   0x1   :  { %14 = vsyncpa [#allocation6], 0 }
   0x2   :  { %15 = vsyncpa [#allocation4], 0 }
   0x3   :  { %16 = vsyncpa [#allocation10], 0  ;;  %s549_s24 = smov [#allocation5]   ;;  %s431_s28 = scalar_lea.hbm %s688_s1, 128 }
   0x4   :  { %s32_s25 = sshll.u32 %s549_s24, 4  ;;  %p432_p0 = scmp.ne.s32.totalorder %s688_s1, %s431_s28  ;;  %s33_s25 = int_to_ptr.vmem [resolvable:$true] %s32_s25 }
   0x5   :  { %p435_p1 = scmp.lt.u32.totalorder %s431_s28, %s688_s1 }
   0x7   :  { %p437_p2 = pnand %p435_p1, %p432_p0 }
   0x9   :  { %440 = shalt.err (!%p437_p2)
}
   0xa   :  { %s441_s10 = scalar_lea.vmem %s33_s25, 128  ;;  %p446_p4 = scmp.lt.s32.totalorder %s33_s25, %s33_s25 }
   0xb   :  { %p442_p3 = scmp.ne.s32.totalorder %s33_s25, %s441_s10  ;;  %p447_p5 = scmp.lt.s32.totalorder %s441_s10, %s441_s10 }
   0xd   :  { %p448_p6 = por %p447_p5, %p446_p4 }
   0xf   :  { %p449_p7 = pnand %p448_p6, %p442_p3 }
  0x11   :  { %452 = shalt.err (!%p449_p7)
}
  0x12   :  { %s550_s11 = smov 64   ;;  %s551_s12 = smov 4  }
  0x13   :  { %38 = dma.hbm_to_vmem [thread:$0]  %s688_s1, 128, %s33_s25, [#allocation6], %s550_s11, %s550_s11, %s551_s12  }
  0x14   :  { %s552_s15 = smov [#allocation2]   ;;  %s553_s17 = smov [#allocation7]  }
  0x15   :  { %s23_s16 = sshll.u32 %s552_s15, 4  ;;  %s46_s18 = sshll.u32 %s553_s17, 4  ;;  %s24_s16 = int_to_ptr.vmem [resolvable:$true] %s23_s16  ;;  %s47_s18 = int_to_ptr.vmem [resolvable:$true] %s46_s18 }
  0x16   :  { %s453_s21 = scalar_lea.hbm %s687_s0, 32 }
  0x17   :  { %p454_p8 = scmp.ne.s32.totalorder %s687_s0, %s453_s21  ;;  %p457_p9 = scmp.lt.u32.totalorder %s453_s21, %s687_s0 }
  0x19   :  { %p459_p10 = pnand %p457_p9, %p454_p8 }
  0x1b   :  { %462 = shalt.err (!%p459_p10)
}
  0x1c   :  { %s463_s1 = scalar_lea.vmem %s24_s16, 32  ;;  %p468_p12 = scmp.lt.s32.totalorder %s24_s16, %s24_s16 }
  0x1d   :  { %p464_p11 = scmp.ne.s32.totalorder %s24_s16, %s463_s1  ;;  %p469_p13 = scmp.lt.s32.totalorder %s463_s1, %s463_s1 }
  0x1f   :  { %p470_p0 = por %p469_p13, %p468_p12 }
  0x21   :  { %p471_p1 = pnand %p470_p0, %p464_p11 }
  0x23   :  { %474 = shalt.err (!%p471_p1)
}
  0x24   :  { %26 = dma.hbm_to_vmem [thread:$0]  %s687_s0, 32, %s24_s16, [#allocation3]  }
  0x25   :  { %s475_s30 = scalar_lea.hbm %s690_s3, 512 }
  0x26   :  { %p476_p2 = scmp.ne.s32.totalorder %s690_s3, %s475_s30  ;;  %p479_p3 = scmp.lt.u32.totalorder %s475_s30, %s690_s3 }
  0x28   :  { %p481_p4 = pnand %p479_p3, %p476_p2 }
  0x2a   :  { %484 = shalt.err (!%p481_p4)
}
  0x2b   :  { %s485_s12 = scalar_lea.vmem %s47_s18, 512  ;;  %p490_p6 = scmp.lt.s32.totalorder %s47_s18, %s47_s18 }
  0x2c   :  { %p486_p5 = scmp.ne.s32.totalorder %s47_s18, %s485_s12  ;;  %p491_p7 = scmp.lt.s32.totalorder %s485_s12, %s485_s12 }
  0x2e   :  { %p492_p8 = por %p491_p7, %p490_p6 }
  0x30   :  { %p493_p9 = pnand %p492_p8, %p486_p5 }
  0x32   :  { %496 = shalt.err (!%p493_p9)
}
  0x33   :  { %s554_s0 = smov 128   ;;  %s555_s13 = smov 8  }
  0x34   :  { %52 = dma.hbm_to_vmem [thread:$0]  %s690_s3, 512, %s47_s18, [#allocation6], %s554_s0, %s554_s0, %s555_s13  }
  0x35   :  { %541 = dma.done.wait [#allocation3], 32  }
  0x36   :  { %542 = vsyncadd [#allocation3], 4294967264 }
  0x37   :  { %543 = dma.done.wait [#allocation6], 640  }
  0x38   :  { %544 = vsyncadd [#allocation6], 4294966656  ;;  %v556_v0 = vmov 0.0|0.0   ;;  %v557_v1 = vmov 0.0   ;;  %vm558_vm0 = vmmov 0   ;;  %v70_v2 = vld [vmem:[#allocation7] sm:$0xff]  ;;  %v218_v15 = vlaneseq }
  0x39   :  { %400 = vmatprep.subr.bf16.mxu0 %v556_v0  ;;  %392 = vmatprep.subr.bf16.mxu1 %v557_v1  ;;  %v71_v3 = vld [vmem:[#allocation7 + $0x8] sm:$0xff]  ;;  %v72_v6 = vld [vmem:[#allocation7 + $0x10] sm:$0xff]  ;;  %v73_v7 = vld [vmem:[#allocation7 + $0x18] sm:$0xff]  ;;  %vm169_vm1 = vcmask 1043456   ;;  %vm74_vm2 = vcmask 261120   ;;  %vm165_vm3 = vcmask 195584  }
  0x3a   :  { %389 = vmatprep.mubr.msk.f32.mxu0 %vm558_vm0, %v557_v1  ;;  %396 = vmatprep.mubr.msk.bf16.mxu1 %vm558_vm0, %v557_v1  ;;  %v401_v4 = vpack.c.bf16 %v71_v3, %v70_v2  ;;  %v419_v5 = vld [vmem:[%s691_s4] sm:$0xff]   ;;  %v404_v8 = vpack.c.bf16 %v73_v7, %v72_v6  ;;  %v420_v9 = vld [vmem:[%s691_s4 + $0x8] ss:$0 sps:$4 sm:$0xff]   ;;  %v644_v10 = vld [vmem:[#allocation5] sm:$0xff]   ;;  %v559_v13 = vmov 1966171168  }
  0x3b   :  { %393 = vmatpush3.bf16.msra.mxu1 %v419_v5  ;;  %v171_v11 = vsel %vm169_vm1, %v420_v9, 0  ;;  %v69_v12 = vld [vmem:[#allocation2] sm:$0x3]  ;;  %v216_v14 = vunpack.c.l.s4 %v559_v13  ;;  %v219_v17 = vshrl.u32 %v218_v15, 7  ;;  %v372_v34 = vld [vmem:[%s692_s5] ss:$0 sm:$0xff] }
  0x3c   :  { %402 = vmatpush3.bf16.msra.mxu0 %v401_v4  ;;  %394 = vmatprep.subr.bf16.mxu1 %v557_v1  ;;  %vm260_vm4 = vcmask 392192   ;;  %v272_v41 = vand.u32 127, %v218_v15  ;;  %v267_v44 = vld [vmem:[%s689_s2] sm:$0x3]  ;;  %vm281_vm5 = vcmask 1041409   ;;  %vm285_vm7 = vcmask 58368  }
  0x3d   :  { %403 = vmatprep.subr.bf16.mxu0 %v556_v0  ;;  %v217_v16 = vunpack.c.0.s8 %v216_v14  ;;  %v239_v23 = vsub.s32 0, %v219_v17  ;;  %vm268_vm6 = vcmp.gt.s32.totalorder %v267_v44, 0  ;;  %v308_v57 = vsub.s32 1, %v219_v17  ;;  %s560_s2 = smov [#allocation9]  }
  0x3e   :  { %v275_v43 = vsub.s32 %v272_v41, %v219_v17  ;;  %s353_s5 = sshll.u32 %s560_s2, 4  ;;  %s354_s5 = int_to_ptr.vmem [resolvable:$true] %s353_s5 }
  0x3f   :  { %395 = vmatpush3.bf16.msra.mxu1 %v171_v11  ;;  %v220_v18 = vsub.s32 %v217_v16, %v219_v17  ;;  %s497_s22 = scalar_lea.vmem %s354_s5, 32  ;;  %p502_p11 = scmp.lt.s32.totalorder %s354_s5, %s354_s5 }
  0x40   :  { %405 = vmatpush3.bf16.msra.mxu0 %v404_v8  ;;  %p498_p10 = scmp.ne.s32.totalorder %s354_s5, %s497_s22  ;;  %p503_p12 = scmp.lt.s32.totalorder %s497_s22, %s497_s22 }
  0x42   :  { %397 = vmatmul.mubr.msk.bf16.vlgmr.msra.gmra.mrb[0].mxu1 %vm165_vm3, %v644_v10  ;;  %p504_p13 = por %p503_p12, %p502_p11 }
  0x43   :  { %390 = vmatmul.mubr.msk.f32.vlgmr.msra.gmra.mrb[0].mxu0 %vm74_vm2, %v69_v12 }
  0x44   :  { %p505_p0 = pnand %p504_p13, %p498_p10 }
 0x115   :  { %v207_v20 = vpop.f32.mrb[0].mxu1 }
 0x116   :  { %v144_v19 = vpop.f32.mrb[0].mxu0  ;;  %v398_v24 = vpop.f32.mrb[1].mxu1 }
 0x117   :  { %v221_v21 = vrot.slane %v144_v19, %v220_v18  ;;  %v391_v22 = vpop.f32.mrb[1].mxu0  ;;  %v210_v25 = vpop.f32.mrb[2].mxu1 }
 0x118   :  { %v399_v28 = vpop.f32.mrb[3].mxu1 }
 0x119   :  { %v222_v26 = vcombine.high %v221_v21, %v221_v21  ;;  %v229_v27 = vrot.slane %v221_v21, %v220_v18 }
 0x11b   :  { %v240_v29 = vrot.slane %v229_v27, %v239_v23  ;;  %v236_v30 = vrot.slane %v222_v26, %v220_v18 }
 0x11d   :  { %v247_v31 = vadd.f32 %v240_v29, %v207_v20  ;;  %v244_v32 = vrot.slane %v236_v30, %v239_v23 }
 0x11f   :  { %423 = vtanh.f32 %v247_v31  ;;  %v248_v33 = vadd.f32 %v244_v32, %v210_v25 }
 0x121   :  { %425 = vtanh.f32 %v248_v33 }
 0x129   :  { %v424_v35 = vpop.eup %423 }
 0x12a   :  { %v258_v36 = vmul.f32 %v424_v35, %v372_v34 }
 0x12b   :  { %v426_v37 = vpop.eup %425 }
 0x12c   :  { %v261_v38 = vsel %vm260_vm4, %v258_v36, 0.0  ;;  %v259_v39 = vmul.f32 %v426_v37, %v372_v34 }
 0x12d   :  { %262 = vadd.xlane.f32.xlu0 %v261_v38 }
 0x12e   :  { %v264_v40 = vsel %vm260_vm4, %v259_v39, 0.0 }
 0x131   :  { %265 = vadd.xlane.f32.xlu0 %v264_v40 }
 0x1ba   :  { %v263_v42 = vpop.xlane.xlu0 %262 }
 0x1bb   :  { %v276_v46 = vrot.slane %v263_v42, %v275_v43 }
 0x1be   :  { %v266_v45 = vpop.xlane.xlu0 %265 }
 0x1bf   :  { %v280_v47 = vrot.slane %v266_v45, %v275_v43 }
 0x1c1   :  { %v282_v48 = vsel %vm281_vm5, %v280_v47, %v276_v46 }
 0x1c2   :  { %v284_v49 = vsel %vm268_vm6, -1e+30, %v282_v48 }
 0x1c3   :  { %v286_v50 = vsel %vm285_vm7, %v284_v49, -inf }
 0x1c4   :  { %287 = vmax.xlane.f32.xlu1 %v286_v50 }
 0x251   :  { %v288_v51 = vpop.xlane.xlu1 %287 }
 0x252   :  { %v289_v52 = vsub.f32 %v284_v49, %v288_v51 }
 0x254   :  { %v290_v53 = vmul.f32 1.442695, %v289_v52 }
 0x256   :  { %427 = vpow2.f32 %v290_v53 }
 0x260   :  { %v428_v54 = vpop.eup %427 }
 0x261   :  { %v292_v55 = vsel %vm285_vm7, %v428_v54, 0.0 }
 0x262   :  { %293 = vadd.xlane.f32.xlu1 %v292_v55 }
 0x2ef   :  { %v294_v56 = vpop.xlane.xlu1 %293 }
 0x2f0   :  { %429 = vrcp.f32 %v294_v56 }
 0x2fa   :  { %v430_v58 = vpop.eup %429 }
 0x2fb   :  { %v297_v59 = vmul.f32 %v430_v58, %v428_v54 }
 0x2fd   :  { %v309_v60 = vrot.slane %v297_v59, %v308_v57  ;;  %298 = vst.msk [vmem:[#allocation9] sm:$0x3] %vm285_vm7, %v297_v59  ;;  %v302_v61 = vrot.slane %v297_v59, %v239_v23 }
 0x2ff   :  { %311 = vbcast.lane.b32.xlu1 %v309_v60, 256  ;;  %304 = vbcast.lane.b32.xlu0 %v302_v61, 256 }
 0x300   :  { %508 = shalt.err (!%p505_p0)
}
 0x301   :  { %s509_s26 = scalar_lea.hbm %s694_s7, 32 }
 0x302   :  { %p510_p1 = scmp.ne.s32.totalorder %s694_s7, %s509_s26  ;;  %p513_p2 = scmp.lt.u32.totalorder %s509_s26, %s694_s7 }
 0x304   :  { %p515_p3 = pnand %p513_p2, %p510_p1 }
 0x306   :  { %518 = shalt.err (!%p515_p3)
}
 0x307   :  { %356 = dma.vmem_to_hbm [thread:$0]  %s354_s5, 32, %s694_s7, [#allocation10]   ;;  %v314_v62 = vunpack.c.h.bf16 %v644_v10  ;;  %v313_v63 = vunpack.c.l.bf16 %v644_v10  ;;  %vm335_vm8 = vcmask 189440  }
 0x308   :  { %s561_s7 = smov [#allocation8]  }
 0x309   :  { %s343_s8 = sshll.u32 %s561_s7, 4  ;;  %s344_s8 = int_to_ptr.vmem [resolvable:$true] %s343_s8 }
 0x30a   :  { %s519_s9 = scalar_lea.vmem %s344_s8, 32  ;;  %p524_p5 = scmp.lt.s32.totalorder %s344_s8, %s344_s8 }
 0x30b   :  { %p520_p4 = scmp.ne.s32.totalorder %s344_s8, %s519_s9  ;;  %p525_p6 = scmp.lt.s32.totalorder %s519_s9, %s519_s9 }
 0x30d   :  { %p526_p7 = por %p525_p6, %p524_p5 }
 0x30f   :  { %p527_p8 = pnand %p526_p7, %p520_p4 }
 0x371   :  { %v312_v0 = vpop.permute.xlu1 %311  ;;  %v305_v1 = vpop.permute.xlu0 %304 }
 0x372   :  { %v316_v2 = vmul.f32 %v314_v62, %v312_v0  ;;  %v315_v3 = vmul.f32 %v313_v63, %v305_v1 }
 0x374   :  { %v324_v4 = vsel %vm165_vm3, %v316_v2, 0.0  ;;  %v317_v5 = vsel %vm165_vm3, %v315_v3, 0.0 }
 0x375   :  { %v325_v6 = vrot.slane %v324_v4, 4  ;;  %v318_v7 = vrot.slane %v317_v5, 4 }
 0x377   :  { %v326_v8 = vadd.f32 %v325_v6, %v324_v4  ;;  %v319_v9 = vadd.f32 %v318_v7, %v317_v5 }
 0x379   :  { %v327_v11 = vrot.slane %v326_v8, 2  ;;  %v320_v12 = vrot.slane %v319_v9, 2 }
 0x37b   :  { %v328_v13 = vadd.f32 %v327_v11, %v326_v8  ;;  %v321_v14 = vadd.f32 %v320_v12, %v319_v9 }
 0x37d   :  { %v329_v15 = vrot.slane %v328_v13, 1  ;;  %v322_v16 = vrot.slane %v321_v14, 1 }
 0x37f   :  { %v330_v10 = vadd.f32 %v329_v15, %v328_v13  ;;  %v323_v17 = vadd.f32 %v322_v16, %v321_v14 }
 0x381   :  { %v333_v18 = vsel %vm281_vm5, %v330_v10, %v323_v17 }
 0x382   :  { %336 = vst.msk [vmem:[#allocation8] sm:$0x3] %vm335_vm8, %v333_v18 }
 0x383   :  { %530 = shalt.err (!%p527_p8)
}
 0x384   :  { %s531_s12 = scalar_lea.hbm %s693_s6, 32 }
 0x385   :  { %p532_p9 = scmp.ne.s32.totalorder %s693_s6, %s531_s12  ;;  %p535_p10 = scmp.lt.u32.totalorder %s531_s12, %s693_s6 }
 0x387   :  { %p537_p11 = pnand %p535_p10, %p532_p9 }
 0x389   :  { %540 = shalt.err (!%p537_p11)
}
 0x38a   :  { %346 = dma.vmem_to_hbm [thread:$0]  %s344_s8, 32, %s693_s6, [#allocation4]  }
 0x38b   :  { %545 = dma.done.wait [#allocation4], 32  }
 0x38c   :  { %546 = vsyncadd [#allocation4], 4294967264 }
 0x38d   :  { %547 = dma.done.wait [#allocation10], 32  }
 0x38e   :  { %548 = vsyncadd [#allocation10], 4294967264 }
 0x38f   :  { %363 = vsyncpa [#allocation3], 1 }
 0x390   :  { %364 = vsyncpa [#allocation6], 1 }
 0x391   :  { %365 = vsyncpa [#allocation4], 1 }
 0x392   :  { %366 = vsyncpa [#allocation10], 1 }

</bundles_post_ra>
